<compile_context>
chip_gen: v6e
topology: v6e:2x2x1
jax: 0.10.0
libtpu: 0.0.40
codegen_flags: <defaults>
</compile_context>

<pallas_src>
import math

import numpy as np
import jax
import jax.numpy as jnp
from jax import lax
from jax.experimental import pallas as pl
from jax.experimental.pallas import tpu as pltpu

_DROPOUT_P = 0.5                 # torch.nn.functional.dropout default
_TWO_PI = np.float32(2.0 * math.pi)
_LANES = 128
_MAX_TILE_ROWS = 1024            # rows of 128 lanes per grid step (upper bound)

# splitmix / lowbias32-style mixing constants (as numpy scalars: no device work
# at import time, and uint32 arithmetic wraps mod 2**32).
_M1 = np.uint32(0x7FEB352D)
_M2 = np.uint32(0x846CA68B)
_GOLD = np.uint32(0x9E3779B9)
_INV24 = np.float32(1.0 / (1 << 24))


def _mix32(x):
    """32-bit integer mixer (uint32 in, uint32 out)."""
    x = x ^ (x >> 16)
    x = x * _M1
    x = x ^ (x >> 15)
    x = x * _M2
    x = x ^ (x >> 16)
    return x


def _bits(idx_u32, salt_u32):
    h = _mix32(idx_u32 ^ salt_u32)
    return _mix32(h + _GOLD)


def _uniform_co(idx_u32, salt_u32):
    """Uniform in [0, 1) from counter + salt."""
    b = (_bits(idx_u32, salt_u32) >> 8).astype(jnp.int32)   # [0, 2^24)
    return b.astype(jnp.float32) * _INV24


def _uniform_oc(idx_u32, salt_u32):
    """Uniform in (0, 1] (safe for log)."""
    b = (_bits(idx_u32, salt_u32) >> 8).astype(jnp.int32)
    return (b.astype(jnp.float32) + 1.0) * _INV24


def _make_kernel(total, tile_rows):
    half = tile_rows // 2
    elems_per_tile = tile_rows * _LANES

    def kernel(salts_ref, a3_ref, a4_ref, nsum_acc, usum_acc):
        # salts_ref : SMEM (4,) int32   -- per-stream salts derived from seed
        # a3_ref    : VMEM (1,1) f32    -- sum(randn_like(a1))
        # a4_ref    : VMEM (1,1) f32    -- dropout(sum(rand_like(a1)), p=0.5)
        # nsum_acc, usum_acc : VMEM (1,1) f32 scratch accumulators
        pid = pl.program_id(0)
        nprog = pl.num_programs(0)

        @pl.when(pid == 0)
        def _():
            nsum_acc[...] = jnp.zeros_like(nsum_acc)
            usum_acc[...] = jnp.zeros_like(usum_acc)

        salt_a2 = salts_ref[0].astype(jnp.uint32)
        salt_u1 = salts_ref[1].astype(jnp.uint32)
        salt_u2 = salts_ref[2].astype(jnp.uint32)
        salt_kp = salts_ref[3].astype(jnp.uint32)

        # Global element indices for the two halves of this tile.
        row = lax.broadcasted_iota(jnp.int32, (half, _LANES), 0)
        lane = lax.broadcasted_iota(jnp.int32, (half, _LANES), 1)
        base = pid * elems_per_tile
        g_top = base + row * _LANES + lane
        g_bot = g_top + half * _LANES
        vt = g_top < total
        vb = g_bot < total
        gtu = g_top.astype(jnp.uint32)
        gbu = g_bot.astype(jnp.uint32)

        # ---- a2 = rand_like(a1): uniform [0, 1), masked partial sum --------
        a2_sum = (
            jnp.sum(jnp.where(vt, _uniform_co(gtu, salt_a2), 0.0), keepdims=True)
            + jnp.sum(jnp.where(vb, _uniform_co(gbu, salt_a2), 0.0), keepdims=True)
        )
        usum_acc[...] += a2_sum

        # ---- randn_like: Box-Muller, both outputs used ----------------------
        # n1 covers the first half of the tile's elements, n2 the second half.
        u1 = _uniform_oc(gtu, salt_u1)          # (0, 1]
        u2 = _uniform_co(gtu, salt_u2)          # [0, 1)
        r = jnp.sqrt(-2.0 * jnp.log(u1))
        th = _TWO_PI * u2
        n_sum = (
            jnp.sum(jnp.where(vt, r * jnp.cos(th), 0.0), keepdims=True)
            + jnp.sum(jnp.where(vb, r * jnp.sin(th), 0.0), keepdims=True)
        )
        nsum_acc[...] += n_sum

        # ---- finalize on the last grid step ---------------------------------
        @pl.when(pid == nprog - 1)
        def _():
            a3_ref[...] = nsum_acc[...]

            # dropout keep bit from one minimal (8,128) draw
            kr = lax.broadcasted_iota(jnp.int32, (8, _LANES), 0)
            kl = lax.broadcasted_iota(jnp.int32, (8, _LANES), 1)
            ku = (kr * _LANES + kl).astype(jnp.uint32)
            keep_u = _uniform_co(ku, salt_kp)
            keep = keep_u[0:1, 0:1] >= np.float32(_DROPOUT_P)   # P(keep)=0.5
            scale = np.float32(1.0 / (1.0 - _DROPOUT_P))        # 2.0
            a4_ref[...] = jnp.where(keep, usum_acc[...] * scale,
                                    jnp.zeros_like(usum_acc))

    return kernel


def _mix_py(x):
    """Host-side 32-bit mixer (mirrors _mix32) for deriving per-stream salts."""
    x &= 0xFFFFFFFF
    x ^= x >> 16
    x = (x * 0x7FEB352D) & 0xFFFFFFFF
    x ^= x >> 15
    x = (x * 0x846CA68B) & 0xFFFFFFFF
    x ^= x >> 16
    return x


_STREAMS = (0x243F6A88, 0x85A308D3, 0x13198A2E, 0x03707344)  # a2, u1, u2, keep


def model_forward(a1, seed=0):
    """JAX/Pallas equivalent of Model.forward. Returns (a3, a4) scalars."""
    total = int(a1.size)

    # Adaptive tile size: small inputs -> one small tile; large inputs -> up to
    # 1024x128 elements per grid step (few hundred KB of VMEM temporaries).
    rows = max(1, pl.cdiv(total, _LANES))
    tile_rows = max(2, int(min(_MAX_TILE_ROWS, 2 * pl.cdiv(rows, 2))))
    num_tiles = max(1, pl.cdiv(rows, tile_rows))

    salts_np = np.array(
        [_mix_py((int(seed) & 0xFFFFFFFF) ^ s) for s in _STREAMS],
        dtype=np.uint32,
    ).view(np.int32)
    salts = jnp.asarray(salts_np)

    a3, a4 = pl.pallas_call(
        _make_kernel(total, tile_rows),
        out_shape=(
            jax.ShapeDtypeStruct((1, 1), jnp.float32),
            jax.ShapeDtypeStruct((1, 1), jnp.float32),
        ),
        grid=(num_tiles,),
        in_specs=[pl.BlockSpec(memory_space=pltpu.MemorySpace.SMEM)],  # salts
        out_specs=(
            pl.BlockSpec((1, 1), lambda i: (0, 0)),
            pl.BlockSpec((1, 1), lambda i: (0, 0)),
        ),
        scratch_shapes=[
            pltpu.VMEM((1, 1), jnp.float32),   # sum of normals
            pltpu.VMEM((1, 1), jnp.float32),   # sum of uniforms
        ],
        compiler_params=pltpu.CompilerParams(
            dimension_semantics=("arbitrary",),
        ),
    )(salts)

    return a3[0, 0].astype(a1.dtype), a4[0, 0].astype(a1.dtype)


if __name__ == "__main__":
    key = jax.random.PRNGKey(0)
    # small NCHW-style input consistent with the module (values are unused)
    a1 = jax.random.normal(key, (2, 4, 16, 16), dtype=jnp.float32)

    a3, a4 = model_forward(a1, seed=0)
    jax.block_until_ready((a3, a4))

    # sanity: both outputs are finite scalars; a4 is either 0 or 2*sum(a2)
    assert a3.shape == () and a4.shape == ()
    assert bool(jnp.isfinite(a3)) and bool(jnp.isfinite(a4))
    print("KERNEL_OK")
</pallas_src>

<mosaic_0001>
module attributes {stable_mosaic.version = 11 : i64} {
  func.func @kernel(%arg0: i32, %arg1: memref<4xi32, #tpu.memory_space<smem>>, %arg2: memref<1x1xf32, #tpu.memory_space<vmem>>, %arg3: memref<1x1xf32, #tpu.memory_space<vmem>>, %arg4: memref<1x1xf32, #tpu.memory_space<vmem>>, %arg5: memref<1x1xf32, #tpu.memory_space<vmem>>) attributes {dimension_semantics = [#tpu.dimension_semantics<arbitrary>], iteration_bounds = array<i64: 1>, scalar_prefetch = 0 : i64, scratch_operands = 2 : i64, tpu.core_type = #tpu.core_type<tc>, window_params = [{transform_indices = @transform_0, window_bounds = array<i64: 4>}, {pipeline_mode = #tpu.pipeline_mode<synchronous>, transform_indices = @transform_1, window_bounds = array<i64: 1, 1>}, {pipeline_mode = #tpu.pipeline_mode<synchronous>, transform_indices = @transform_2, window_bounds = array<i64: 1, 1>}]} {
    %c0_i32 = arith.constant 0 : i32
    %0 = arith.cmpi eq, %arg0, %c0_i32 : i32
    %1 = arith.extui %0 : i1 to i32
    %c0_i32_0 = arith.constant 0 : i32
    %2 = arith.cmpi ne, %1, %c0_i32_0 : i32
    scf.if %2 {
      %cst_69 = arith.constant 0.000000e+00 : f32
      %212 = vector.broadcast %cst_69 : f32 to vector<1x1xf32>
      %c0_70 = arith.constant 0 : index
      %c0_71 = arith.constant 0 : index
      %213 = vector.load %arg4[%c0_70, %c0_71] : memref<1x1xf32, #tpu.memory_space<vmem>>, vector<1x1xf32>
      tpu.vector_store %arg4[%c0_70, %c0_71], %212 {strides = array<i32>} : memref<1x1xf32, #tpu.memory_space<vmem>>, vector<1x1xf32>,
      %cst_72 = arith.constant 0.000000e+00 : f32
      %214 = vector.broadcast %cst_72 : f32 to vector<1x1xf32>
      %c0_73 = arith.constant 0 : index
      %c0_74 = arith.constant 0 : index
      %215 = vector.load %arg5[%c0_73, %c0_74] : memref<1x1xf32, #tpu.memory_space<vmem>>, vector<1x1xf32>
      tpu.vector_store %arg5[%c0_73, %c0_74], %214 {strides = array<i32>} : memref<1x1xf32, #tpu.memory_space<vmem>>, vector<1x1xf32>,
    } else {
    }
    %c0 = arith.constant 0 : index
    %3 = memref.load %arg1[%c0] : memref<4xi32, #tpu.memory_space<smem>>
    %c1 = arith.constant 1 : index
    %4 = memref.load %arg1[%c1] : memref<4xi32, #tpu.memory_space<smem>>
    %c2 = arith.constant 2 : index
    %5 = memref.load %arg1[%c2] : memref<4xi32, #tpu.memory_space<smem>>
    %c3 = arith.constant 3 : index
    %6 = memref.load %arg1[%c3] : memref<4xi32, #tpu.memory_space<smem>>
    %7 = tpu.iota {dimensions = array<i32: 0>} : vector<8x128xi32>
    %8 = tpu.iota {dimensions = array<i32: 1>} : vector<8x128xi32>
    %c2048_i32 = arith.constant 2048 : i32
    %9 = arith.muli %arg0, %c2048_i32 : i32
    %c128_i32 = arith.constant 128 : i32
    %10 = vector.broadcast %c128_i32 : i32 to vector<8x128xi32>
    %11 = arith.muli %7, %10 : vector<8x128xi32>
    %12 = vector.broadcast %9 : i32 to vector<8x128xi32>
    %13 = arith.addi %12, %11 : vector<8x128xi32>
    %14 = arith.addi %13, %8 : vector<8x128xi32>
    %c1024_i32 = arith.constant 1024 : i32
    %15 = vector.broadcast %c1024_i32 : i32 to vector<8x128xi32>
    %16 = arith.addi %14, %15 : vector<8x128xi32>
    %c2048_i32_1 = arith.constant 2048 : i32
    %17 = vector.broadcast %c2048_i32_1 : i32 to vector<8x128xi32>
    %18 = arith.cmpi slt, %14, %17 : vector<8x128xi32>
    %c2048_i32_2 = arith.constant 2048 : i32
    %19 = vector.broadcast %c2048_i32_2 : i32 to vector<8x128xi32>
    %20 = arith.cmpi slt, %16, %19 : vector<8x128xi32>
    %21 = vector.broadcast %3 : i32 to vector<8x128xi32>
    %22 = arith.xori %14, %21 : vector<8x128xi32>
    %c16_i32 = arith.constant 16 : i32
    %23 = vector.broadcast %c16_i32 : i32 to vector<8x128xi32>
    %24 = arith.shrui %22, %23 : vector<8x128xi32>
    %25 = arith.xori %22, %24 : vector<8x128xi32>
    %c2146121005_i32 = arith.constant 2146121005 : i32
    %26 = vector.broadcast %c2146121005_i32 : i32 to vector<8x128xi32>
    %27 = arith.muli %25, %26 : vector<8x128xi32>
    %c15_i32 = arith.constant 15 : i32
    %28 = vector.broadcast %c15_i32 : i32 to vector<8x128xi32>
    %29 = arith.shrui %27, %28 : vector<8x128xi32>
    %30 = arith.xori %27, %29 : vector<8x128xi32>
    %c-2073254261_i32 = arith.constant -2073254261 : i32
    %31 = vector.broadcast %c-2073254261_i32 : i32 to vector<8x128xi32>
    %32 = arith.muli %30, %31 : vector<8x128xi32>
    %c16_i32_3 = arith.constant 16 : i32
    %33 = vector.broadcast %c16_i32_3 : i32 to vector<8x128xi32>
    %34 = arith.shrui %32, %33 : vector<8x128xi32>
    %35 = arith.xori %32, %34 : vector<8x128xi32>
    %c-1640531527_i32 = arith.constant -1640531527 : i32
    %36 = vector.broadcast %c-1640531527_i32 : i32 to vector<8x128xi32>
    %37 = arith.addi %35, %36 : vector<8x128xi32>
    %c16_i32_4 = arith.constant 16 : i32
    %38 = vector.broadcast %c16_i32_4 : i32 to vector<8x128xi32>
    %39 = arith.shrui %37, %38 : vector<8x128xi32>
    %40 = arith.xori %37, %39 : vector<8x128xi32>
    %c2146121005_i32_5 = arith.constant 2146121005 : i32
    %41 = vector.broadcast %c2146121005_i32_5 : i32 to vector<8x128xi32>
    %42 = arith.muli %40, %41 : vector<8x128xi32>
    %c15_i32_6 = arith.constant 15 : i32
    %43 = vector.broadcast %c15_i32_6 : i32 to vector<8x128xi32>
    %44 = arith.shrui %42, %43 : vector<8x128xi32>
    %45 = arith.xori %42, %44 : vector<8x128xi32>
    %c-2073254261_i32_7 = arith.constant -2073254261 : i32
    %46 = vector.broadcast %c-2073254261_i32_7 : i32 to vector<8x128xi32>
    %47 = arith.muli %45, %46 : vector<8x128xi32>
    %c16_i32_8 = arith.constant 16 : i32
    %48 = vector.broadcast %c16_i32_8 : i32 to vector<8x128xi32>
    %49 = arith.shrui %47, %48 : vector<8x128xi32>
    %50 = arith.xori %47, %49 : vector<8x128xi32>
    %c8_i32 = arith.constant 8 : i32
    %51 = vector.broadcast %c8_i32 : i32 to vector<8x128xi32>
    %52 = arith.shrui %50, %51 : vector<8x128xi32>
    %53 = arith.sitofp %52 : vector<8x128xi32> to vector<8x128xf32>
    %cst = arith.constant 5.96046448E-8 : f32
    %54 = vector.broadcast %cst : f32 to vector<8x128xf32>
    %55 = arith.mulf %53, %54 : vector<8x128xf32>
    %cst_9 = arith.constant 0.000000e+00 : f32
    %56 = vector.broadcast %cst_9 : f32 to vector<8x128xf32>
    %57 = arith.select %18, %55, %56 : vector<8x128xi1>, vector<8x128xf32>
    %58 = vector.shape_cast %57 : vector<8x128xf32> to vector<1x8x128xf32>
    %cst_10 = arith.constant dense<0.000000e+00> : vector<1xf32>
    %59 = vector.multi_reduction <add>, %58, %cst_10 [1, 2] : vector<1x8x128xf32> to vector<1xf32>
    %60 = vector.shape_cast %59 : vector<1xf32> to vector<1x1x1xf32>
    %61 = vector.extract %60[0, 0, 0] : f32 from vector<1x1x1xf32>
    %62 = vector.broadcast %61 : f32 to vector<1x1xf32>
    %63 = vector.broadcast %3 : i32 to vector<8x128xi32>
    %64 = arith.xori %16, %63 : vector<8x128xi32>
    %c16_i32_11 = arith.constant 16 : i32
    %65 = vector.broadcast %c16_i32_11 : i32 to vector<8x128xi32>
    %66 = arith.shrui %64, %65 : vector<8x128xi32>
    %67 = arith.xori %64, %66 : vector<8x128xi32>
    %c2146121005_i32_12 = arith.constant 2146121005 : i32
    %68 = vector.broadcast %c2146121005_i32_12 : i32 to vector<8x128xi32>
    %69 = arith.muli %67, %68 : vector<8x128xi32>
    %c15_i32_13 = arith.constant 15 : i32
    %70 = vector.broadcast %c15_i32_13 : i32 to vector<8x128xi32>
    %71 = arith.shrui %69, %70 : vector<8x128xi32>
    %72 = arith.xori %69, %71 : vector<8x128xi32>
    %c-2073254261_i32_14 = arith.constant -2073254261 : i32
    %73 = vector.broadcast %c-2073254261_i32_14 : i32 to vector<8x128xi32>
    %74 = arith.muli %72, %73 : vector<8x128xi32>
    %c16_i32_15 = arith.constant 16 : i32
    %75 = vector.broadcast %c16_i32_15 : i32 to vector<8x128xi32>
    %76 = arith.shrui %74, %75 : vector<8x128xi32>
    %77 = arith.xori %74, %76 : vector<8x128xi32>
    %c-1640531527_i32_16 = arith.constant -1640531527 : i32
    %78 = vector.broadcast %c-1640531527_i32_16 : i32 to vector<8x128xi32>
    %79 = arith.addi %77, %78 : vector<8x128xi32>
    %c16_i32_17 = arith.constant 16 : i32
    %80 = vector.broadcast %c16_i32_17 : i32 to vector<8x128xi32>
    %81 = arith.shrui %79, %80 : vector<8x128xi32>
    %82 = arith.xori %79, %81 : vector<8x128xi32>
    %c2146121005_i32_18 = arith.constant 2146121005 : i32
    %83 = vector.broadcast %c2146121005_i32_18 : i32 to vector<8x128xi32>
    %84 = arith.muli %82, %83 : vector<8x128xi32>
    %c15_i32_19 = arith.constant 15 : i32
    %85 = vector.broadcast %c15_i32_19 : i32 to vector<8x128xi32>
    %86 = arith.shrui %84, %85 : vector<8x128xi32>
    %87 = arith.xori %84, %86 : vector<8x128xi32>
    %c-2073254261_i32_20 = arith.constant -2073254261 : i32
    %88 = vector.broadcast %c-2073254261_i32_20 : i32 to vector<8x128xi32>
    %89 = arith.muli %87, %88 : vector<8x128xi32>
    %c16_i32_21 = arith.constant 16 : i32
    %90 = vector.broadcast %c16_i32_21 : i32 to vector<8x128xi32>
    %91 = arith.shrui %89, %90 : vector<8x128xi32>
    %92 = arith.xori %89, %91 : vector<8x128xi32>
    %c8_i32_22 = arith.constant 8 : i32
    %93 = vector.broadcast %c8_i32_22 : i32 to vector<8x128xi32>
    %94 = arith.shrui %92, %93 : vector<8x128xi32>
    %95 = arith.sitofp %94 : vector<8x128xi32> to vector<8x128xf32>
    %cst_23 = arith.constant 5.96046448E-8 : f32
    %96 = vector.broadcast %cst_23 : f32 to vector<8x128xf32>
    %97 = arith.mulf %95, %96 : vector<8x128xf32>
    %cst_24 = arith.constant 0.000000e+00 : f32
    %98 = vector.broadcast %cst_24 : f32 to vector<8x128xf32>
    %99 = arith.select %20, %97, %98 : vector<8x128xi1>, vector<8x128xf32>
    %100 = vector.shape_cast %99 : vector<8x128xf32> to vector<1x8x128xf32>
    %cst_25 = arith.constant dense<0.000000e+00> : vector<1xf32>
    %101 = vector.multi_reduction <add>, %100, %cst_25 [1, 2] : vector<1x8x128xf32> to vector<1xf32>
    %102 = vector.shape_cast %101 : vector<1xf32> to vector<1x1x1xf32>
    %103 = vector.extract %102[0, 0, 0] : f32 from vector<1x1x1xf32>
    %104 = vector.broadcast %103 : f32 to vector<1x1xf32>
    %105 = arith.addf %62, %104 : vector<1x1xf32>
    %c0_26 = arith.constant 0 : index
    %c0_27 = arith.constant 0 : index
    %106 = vector.load %arg5[%c0_26, %c0_27] : memref<1x1xf32, #tpu.memory_space<vmem>>, vector<1x1xf32>
    %107 = arith.addf %106, %105 : vector<1x1xf32>
    %c0_28 = arith.constant 0 : index
    %c0_29 = arith.constant 0 : index
    %108 = vector.load %arg5[%c0_28, %c0_29] : memref<1x1xf32, #tpu.memory_space<vmem>>, vector<1x1xf32>
    tpu.vector_store %arg5[%c0_28, %c0_29], %107 {strides = array<i32>} : memref<1x1xf32, #tpu.memory_space<vmem>>, vector<1x1xf32>,
    %109 = vector.broadcast %4 : i32 to vector<8x128xi32>
    %110 = arith.xori %14, %109 : vector<8x128xi32>
    %c16_i32_30 = arith.constant 16 : i32
    %111 = vector.broadcast %c16_i32_30 : i32 to vector<8x128xi32>
    %112 = arith.shrui %110, %111 : vector<8x128xi32>
    %113 = arith.xori %110, %112 : vector<8x128xi32>
    %c2146121005_i32_31 = arith.constant 2146121005 : i32
    %114 = vector.broadcast %c2146121005_i32_31 : i32 to vector<8x128xi32>
    %115 = arith.muli %113, %114 : vector<8x128xi32>
    %c15_i32_32 = arith.constant 15 : i32
    %116 = vector.broadcast %c15_i32_32 : i32 to vector<8x128xi32>
    %117 = arith.shrui %115, %116 : vector<8x128xi32>
    %118 = arith.xori %115, %117 : vector<8x128xi32>
    %c-2073254261_i32_33 = arith.constant -2073254261 : i32
    %119 = vector.broadcast %c-2073254261_i32_33 : i32 to vector<8x128xi32>
    %120 = arith.muli %118, %119 : vector<8x128xi32>
    %c16_i32_34 = arith.constant 16 : i32
    %121 = vector.broadcast %c16_i32_34 : i32 to vector<8x128xi32>
    %122 = arith.shrui %120, %121 : vector<8x128xi32>
    %123 = arith.xori %120, %122 : vector<8x128xi32>
    %c-1640531527_i32_35 = arith.constant -1640531527 : i32
    %124 = vector.broadcast %c-1640531527_i32_35 : i32 to vector<8x128xi32>
    %125 = arith.addi %123, %124 : vector<8x128xi32>
    %c16_i32_36 = arith.constant 16 : i32
    %126 = vector.broadcast %c16_i32_36 : i32 to vector<8x128xi32>
    %127 = arith.shrui %125, %126 : vector<8x128xi32>
    %128 = arith.xori %125, %127 : vector<8x128xi32>
    %c2146121005_i32_37 = arith.constant 2146121005 : i32
    %129 = vector.broadcast %c2146121005_i32_37 : i32 to vector<8x128xi32>
    %130 = arith.muli %128, %129 : vector<8x128xi32>
    %c15_i32_38 = arith.constant 15 : i32
    %131 = vector.broadcast %c15_i32_38 : i32 to vector<8x128xi32>
    %132 = arith.shrui %130, %131 : vector<8x128xi32>
    %133 = arith.xori %130, %132 : vector<8x128xi32>
    %c-2073254261_i32_39 = arith.constant -2073254261 : i32
    %134 = vector.broadcast %c-2073254261_i32_39 : i32 to vector<8x128xi32>
    %135 = arith.muli %133, %134 : vector<8x128xi32>
    %c16_i32_40 = arith.constant 16 : i32
    %136 = vector.broadcast %c16_i32_40 : i32 to vector<8x128xi32>
    %137 = arith.shrui %135, %136 : vector<8x128xi32>
    %138 = arith.xori %135, %137 : vector<8x128xi32>
    %c8_i32_41 = arith.constant 8 : i32
    %139 = vector.broadcast %c8_i32_41 : i32 to vector<8x128xi32>
    %140 = arith.shrui %138, %139 : vector<8x128xi32>
    %141 = arith.sitofp %140 : vector<8x128xi32> to vector<8x128xf32>
    %cst_42 = arith.constant 1.000000e+00 : f32
    %142 = vector.broadcast %cst_42 : f32 to vector<8x128xf32>
    %143 = arith.addf %141, %142 : vector<8x128xf32>
    %cst_43 = arith.constant 5.96046448E-8 : f32
    %144 = vector.broadcast %cst_43 : f32 to vector<8x128xf32>
    %145 = arith.mulf %143, %144 : vector<8x128xf32>
    %146 = vector.broadcast %5 : i32 to vector<8x128xi32>
    %147 = arith.xori %14, %146 : vector<8x128xi32>
    %c16_i32_44 = arith.constant 16 : i32
    %148 = vector.broadcast %c16_i32_44 : i32 to vector<8x128xi32>
    %149 = arith.shrui %147, %148 : vector<8x128xi32>
    %150 = arith.xori %147, %149 : vector<8x128xi32>
    %c2146121005_i32_45 = arith.constant 2146121005 : i32
    %151 = vector.broadcast %c2146121005_i32_45 : i32 to vector<8x128xi32>
    %152 = arith.muli %150, %151 : vector<8x128xi32>
    %c15_i32_46 = arith.constant 15 : i32
    %153 = vector.broadcast %c15_i32_46 : i32 to vector<8x128xi32>
    %154 = arith.shrui %152, %153 : vector<8x128xi32>
    %155 = arith.xori %152, %154 : vector<8x128xi32>
    %c-2073254261_i32_47 = arith.constant -2073254261 : i32
    %156 = vector.broadcast %c-2073254261_i32_47 : i32 to vector<8x128xi32>
    %157 = arith.muli %155, %156 : vector<8x128xi32>
    %c16_i32_48 = arith.constant 16 : i32
    %158 = vector.broadcast %c16_i32_48 : i32 to vector<8x128xi32>
    %159 = arith.shrui %157, %158 : vector<8x128xi32>
    %160 = arith.xori %157, %159 : vector<8x128xi32>
    %c-1640531527_i32_49 = arith.constant -1640531527 : i32
    %161 = vector.broadcast %c-1640531527_i32_49 : i32 to vector<8x128xi32>
    %162 = arith.addi %160, %161 : vector<8x128xi32>
    %c16_i32_50 = arith.constant 16 : i32
    %163 = vector.broadcast %c16_i32_50 : i32 to vector<8x128xi32>
    %164 = arith.shrui %162, %163 : vector<8x128xi32>
    %165 = arith.xori %162, %164 : vector<8x128xi32>
    %c2146121005_i32_51 = arith.constant 2146121005 : i32
    %166 = vector.broadcast %c2146121005_i32_51 : i32 to vector<8x128xi32>
    %167 = arith.muli %165, %166 : vector<8x128xi32>
    %c15_i32_52 = arith.constant 15 : i32
    %168 = vector.broadcast %c15_i32_52 : i32 to vector<8x128xi32>
    %169 = arith.shrui %167, %168 : vector<8x128xi32>
    %170 = arith.xori %167, %169 : vector<8x128xi32>
    %c-2073254261_i32_53 = arith.constant -2073254261 : i32
    %171 = vector.broadcast %c-2073254261_i32_53 : i32 to vector<8x128xi32>
    %172 = arith.muli %170, %171 : vector<8x128xi32>
    %c16_i32_54 = arith.constant 16 : i32
    %173 = vector.broadcast %c16_i32_54 : i32 to vector<8x128xi32>
    %174 = arith.shrui %172, %173 : vector<8x128xi32>
    %175 = arith.xori %172, %174 : vector<8x128xi32>
    %c8_i32_55 = arith.constant 8 : i32
    %176 = vector.broadcast %c8_i32_55 : i32 to vector<8x128xi32>
    %177 = arith.shrui %175, %176 : vector<8x128xi32>
    %178 = arith.sitofp %177 : vector<8x128xi32> to vector<8x128xf32>
    %cst_56 = arith.constant 5.96046448E-8 : f32
    %179 = vector.broadcast %cst_56 : f32 to vector<8x128xf32>
    %180 = arith.mulf %178, %179 : vector<8x128xf32>
    %181 = math.log %145 : vector<8x128xf32>
    %cst_57 = arith.constant -2.000000e+00 : f32
    %182 = vector.broadcast %cst_57 : f32 to vector<8x128xf32>
    %183 = arith.mulf %182, %181 : vector<8x128xf32>
    %184 = math.sqrt %183 : vector<8x128xf32>
    %cst_58 = arith.constant 6.28318548 : f32
    %185 = vector.broadcast %cst_58 : f32 to vector<8x128xf32>
    %186 = arith.mulf %185, %180 : vector<8x128xf32>
    %187 = math.cos %186 : vector<8x128xf32>
    %188 = arith.mulf %184, %187 : vector<8x128xf32>
    %cst_59 = arith.constant 0.000000e+00 : f32
    %189 = vector.broadcast %cst_59 : f32 to vector<8x128xf32>
    %190 = arith.select %18, %188, %189 : vector<8x128xi1>, vector<8x128xf32>
    %191 = vector.shape_cast %190 : vector<8x128xf32> to vector<1x8x128xf32>
    %cst_60 = arith.constant dense<0.000000e+00> : vector<1xf32>
    %192 = vector.multi_reduction <add>, %191, %cst_60 [1, 2] : vector<1x8x128xf32> to vector<1xf32>
    %193 = vector.shape_cast %192 : vector<1xf32> to vector<1x1x1xf32>
    %194 = vector.extract %193[0, 0, 0] : f32 from vector<1x1x1xf32>
    %195 = vector.broadcast %194 : f32 to vector<1x1xf32>
    %196 = math.sin %186 : vector<8x128xf32>
    %197 = arith.mulf %184, %196 : vector<8x128xf32>
    %cst_61 = arith.constant 0.000000e+00 : f32
    %198 = vector.broadcast %cst_61 : f32 to vector<8x128xf32>
    %199 = arith.select %20, %197, %198 : vector<8x128xi1>, vector<8x128xf32>
    %200 = vector.shape_cast %199 : vector<8x128xf32> to vector<1x8x128xf32>
    %cst_62 = arith.constant dense<0.000000e+00> : vector<1xf32>
    %201 = vector.multi_reduction <add>, %200, %cst_62 [1, 2] : vector<1x8x128xf32> to vector<1xf32>
    %202 = vector.shape_cast %201 : vector<1xf32> to vector<1x1x1xf32>
    %203 = vector.extract %202[0, 0, 0] : f32 from vector<1x1x1xf32>
    %204 = vector.broadcast %203 : f32 to vector<1x1xf32>
    %205 = arith.addf %195, %204 : vector<1x1xf32>
    %c0_63 = arith.constant 0 : index
    %c0_64 = arith.constant 0 : index
    %206 = vector.load %arg4[%c0_63, %c0_64] : memref<1x1xf32, #tpu.memory_space<vmem>>, vector<1x1xf32>
    %207 = arith.addf %206, %205 : vector<1x1xf32>
    %c0_65 = arith.constant 0 : index
    %c0_66 = arith.constant 0 : index
    %208 = vector.load %arg4[%c0_65, %c0_66] : memref<1x1xf32, #tpu.memory_space<vmem>>, vector<1x1xf32>
    tpu.vector_store %arg4[%c0_65, %c0_66], %207 {strides = array<i32>} : memref<1x1xf32, #tpu.memory_space<vmem>>, vector<1x1xf32>,
    %c0_i32_67 = arith.constant 0 : i32
    %209 = arith.cmpi eq, %arg0, %c0_i32_67 : i32
    %210 = arith.extui %209 : i1 to i32
    %c0_i32_68 = arith.constant 0 : i32
    %211 = arith.cmpi ne, %210, %c0_i32_68 : i32
    scf.if %211 {
      %c0_69 = arith.constant 0 : index
      %c0_70 = arith.constant 0 : index
      %212 = vector.load %arg4[%c0_69, %c0_70] : memref<1x1xf32, #tpu.memory_space<vmem>>, vector<1x1xf32>
      %c0_71 = arith.constant 0 : index
      %c0_72 = arith.constant 0 : index
      %213 = vector.load %arg2[%c0_71, %c0_72] : memref<1x1xf32, #tpu.memory_space<vmem>>, vector<1x1xf32>
      tpu.vector_store %arg2[%c0_71, %c0_72], %212 {strides = array<i32>} : memref<1x1xf32, #tpu.memory_space<vmem>>, vector<1x1xf32>,
      %214 = tpu.iota {dimensions = array<i32: 0>} : vector<8x128xi32>
      %215 = tpu.iota {dimensions = array<i32: 1>} : vector<8x128xi32>
      %c128_i32_73 = arith.constant 128 : i32
      %216 = vector.broadcast %c128_i32_73 : i32 to vector<8x128xi32>
      %217 = arith.muli %214, %216 : vector<8x128xi32>
      %218 = arith.addi %217, %215 : vector<8x128xi32>
      %219 = vector.broadcast %6 : i32 to vector<8x128xi32>
      %220 = arith.xori %218, %219 : vector<8x128xi32>
      %c16_i32_74 = arith.constant 16 : i32
      %221 = vector.broadcast %c16_i32_74 : i32 to vector<8x128xi32>
      %222 = arith.shrui %220, %221 : vector<8x128xi32>
      %223 = arith.xori %220, %222 : vector<8x128xi32>
      %c2146121005_i32_75 = arith.constant 2146121005 : i32
      %224 = vector.broadcast %c2146121005_i32_75 : i32 to vector<8x128xi32>
      %225 = arith.muli %223, %224 : vector<8x128xi32>
      %c15_i32_76 = arith.constant 15 : i32
      %226 = vector.broadcast %c15_i32_76 : i32 to vector<8x128xi32>
      %227 = arith.shrui %225, %226 : vector<8x128xi32>
      %228 = arith.xori %225, %227 : vector<8x128xi32>
      %c-2073254261_i32_77 = arith.constant -2073254261 : i32
      %229 = vector.broadcast %c-2073254261_i32_77 : i32 to vector<8x128xi32>
      %230 = arith.muli %228, %229 : vector<8x128xi32>
      %c16_i32_78 = arith.constant 16 : i32
      %231 = vector.broadcast %c16_i32_78 : i32 to vector<8x128xi32>
      %232 = arith.shrui %230, %231 : vector<8x128xi32>
      %233 = arith.xori %230, %232 : vector<8x128xi32>
      %c-1640531527_i32_79 = arith.constant -1640531527 : i32
      %234 = vector.broadcast %c-1640531527_i32_79 : i32 to vector<8x128xi32>
      %235 = arith.addi %233, %234 : vector<8x128xi32>
      %c16_i32_80 = arith.constant 16 : i32
      %236 = vector.broadcast %c16_i32_80 : i32 to vector<8x128xi32>
      %237 = arith.shrui %235, %236 : vector<8x128xi32>
      %238 = arith.xori %235, %237 : vector<8x128xi32>
      %c2146121005_i32_81 = arith.constant 2146121005 : i32
      %239 = vector.broadcast %c2146121005_i32_81 : i32 to vector<8x128xi32>
      %240 = arith.muli %238, %239 : vector<8x128xi32>
      %c15_i32_82 = arith.constant 15 : i32
      %241 = vector.broadcast %c15_i32_82 : i32 to vector<8x128xi32>
      %242 = arith.shrui %240, %241 : vector<8x128xi32>
      %243 = arith.xori %240, %242 : vector<8x128xi32>
      %c-2073254261_i32_83 = arith.constant -2073254261 : i32
      %244 = vector.broadcast %c-2073254261_i32_83 : i32 to vector<8x128xi32>
      %245 = arith.muli %243, %244 : vector<8x128xi32>
      %c16_i32_84 = arith.constant 16 : i32
      %246 = vector.broadcast %c16_i32_84 : i32 to vector<8x128xi32>
      %247 = arith.shrui %245, %246 : vector<8x128xi32>
      %248 = arith.xori %245, %247 : vector<8x128xi32>
      %c8_i32_85 = arith.constant 8 : i32
      %249 = vector.broadcast %c8_i32_85 : i32 to vector<8x128xi32>
      %250 = arith.shrui %248, %249 : vector<8x128xi32>
      %251 = arith.sitofp %250 : vector<8x128xi32> to vector<8x128xf32>
      %cst_86 = arith.constant 5.96046448E-8 : f32
      %252 = vector.broadcast %cst_86 : f32 to vector<8x128xf32>
      %253 = arith.mulf %251, %252 : vector<8x128xf32>
      %254 = vector.extract_strided_slice %253 {offsets = [0, 0], sizes = [1, 1], strides = [1, 1]} : vector<8x128xf32> to vector<1x1xf32>
      %cst_87 = arith.constant 5.000000e-01 : f32
      %255 = vector.broadcast %cst_87 : f32 to vector<1x1xf32>
      %256 = arith.cmpf oge, %254, %255 : vector<1x1xf32>
      %c0_88 = arith.constant 0 : index
      %c0_89 = arith.constant 0 : index
      %257 = vector.load %arg5[%c0_88, %c0_89] : memref<1x1xf32, #tpu.memory_space<vmem>>, vector<1x1xf32>
      %cst_90 = arith.constant 2.000000e+00 : f32
      %258 = vector.broadcast %cst_90 : f32 to vector<1x1xf32>
      %259 = arith.mulf %257, %258 : vector<1x1xf32>
      %cst_91 = arith.constant 0.000000e+00 : f32
      %260 = vector.broadcast %cst_91 : f32 to vector<1x1xf32>
      %261 = arith.select %256, %259, %260 : vector<1x1xi1>, vector<1x1xf32>
      %c0_92 = arith.constant 0 : index
      %c0_93 = arith.constant 0 : index
      %262 = vector.load %arg3[%c0_92, %c0_93] : memref<1x1xf32, #tpu.memory_space<vmem>>, vector<1x1xf32>
      tpu.vector_store %arg3[%c0_92, %c0_93], %261 {strides = array<i32>} : memref<1x1xf32, #tpu.memory_space<vmem>>, vector<1x1xf32>,
    } else {
    }
    return
  }
  func.func @transform_0(%arg0: i32) -> i32 {
    %c0_i32 = arith.constant 0 : i32
    %c0_i32_0 = arith.constant 0 : i32
    return %c0_i32 : i32
  }
  func.func @transform_1(%arg0: i32) -> (i32, i32) {
    %c0_i32 = arith.constant 0 : i32
    %c0_i32_0 = arith.constant 0 : i32
    %c0_i32_1 = arith.constant 0 : i32
    return %c0_i32, %c0_i32_0 : i32, i32
  }
  func.func @transform_2(%arg0: i32) -> (i32, i32) {
    %c0_i32 = arith.constant 0 : i32
    %c0_i32_0 = arith.constant 0 : i32
    %c0_i32_1 = arith.constant 0 : i32
    return %c0_i32, %c0_i32_0 : i32, i32
  }
}

</mosaic_0001>

<bundles_post_ra>
// kernel: tpu_custom_call.1
= control target key start
LH: loop header
LB: loop body
LE: loop exit
PB: predicated region body
PF: predicated region fallthrough
CT: control target
= control target key end

     0   :  { %8 = vsyncpa [#allocation6], 0  ;;  %s648_s0 = inlined_call_operand.hbm [shape: s32[4], index: 0, kind: input, shape index: {}]   ;;  %s649_s1 = inlined_call_operand.hbm [shape: f32[1,1], index: 1, kind: output, shape index: {0}]   ;;  %s650_s2 = inlined_call_operand.hbm [shape: f32[1,1], index: 2, kind: output, shape index: {1}]  }
   0x1   :  { %9 = vsyncpa [#allocation5], 0 }
   0x2   :  { %10 = vsyncpa [#allocation9], 0  ;;  %s564_s9 = smov [#allocation4]  }
   0x3   :  { %18 = dma.hbm_to_smem %s648_s0, 16, %s564_s9, [#allocation6]  }
   0x4   :  { %558 = dma.done.wait [#allocation6], 16  }
   0x5   :  { %559 = vsyncadd [#allocation6], 4294967280 }
   0x6   :  { %22 = sfence }
   0x7   :  { %s30_s12 = sld [smem:[#allocation4]]  ;;  %v34_v0 = vlaneseq  ;;  %s572_s17 = smov [#allocation8]  }
   0x8   :  { %s469_s13 = sld [smem:[#allocation4 + $0x1]]  ;;  %s456_s18 = sshll.u32 %s572_s17, 4  ;;  %s457_s18 = int_to_ptr.vmem [resolvable:$true] %s456_s18 }
   0x9   :  { %v35_v1 = vshrl.u32 %v34_v0, 7  ;;  %v37_v2 = vand.u32 127, %v34_v0  ;;  %s470_s14 = sld [smem:[#allocation4 + $0x2]]  ;;  %s518_s19 = scalar_lea.vmem %s457_s18, 16 }
   0xa   :  { %s471_s0 = sld [smem:[#allocation4 + $0x3]]  ;;  %p519_p0 = scmp.ne.s32.totalorder %s457_s18, %s518_s19 }
   0xb   :  { %v39_v3 = vmul.u32 128, %v35_v1  ;;  %s522_s20 = scalar_lea.vmem %s457_s18, 32  ;;  %p523_p1 = scmp.lt.s32.totalorder %s457_s18, %s457_s18 }
   0xc   :  { %p524_p2 = scmp.lt.s32.totalorder %s522_s20, %s518_s19 }
   0xd   :  { %v592_v4 = vadd.s32 %v39_v3, %v37_v2  ;;  %v46_v5 = vstv %s30_s12 }
   0xe   :  { %v116_v6 = vstv %s469_s13  ;;  %p525_p3 = por %p524_p2, %p523_p1 }
   0xf   :  { %v47_v7 = vxor.u32 %v46_v5, %v592_v4  ;;  %v117_v8 = vxor.u32 %v116_v6, %v592_v4  ;;  %v597_v9 = vadd.s32 1024, %v592_v4  ;;  %v139_v10 = vstv %s470_s14 }
  0x10   :  { %v140_v14 = vxor.u32 %v139_v10, %v592_v4  ;;  %vm44_vm0 = vcmp.lt.s32.totalorder %v592_v4, 2048  ;;  %p526_p4 = pnand %p525_p3, %p519_p0 }
  0x11   :  { %v48_v11 = vshrl.u32 %v47_v7, 16  ;;  %v118_v12 = vshrl.u32 %v117_v8, 16  ;;  %v79_v13 = vxor.u32 %v46_v5, %v597_v9  ;;  %vm45_vm1 = vcmp.lt.s32.totalorder %v597_v9, 2048 }
  0x12   :  { %v141_v18 = vshrl.u32 %v140_v14, 16 }
  0x13   :  { %v49_v15 = vxor.u32 %v48_v11, %v47_v7  ;;  %v119_v16 = vxor.u32 %v118_v12, %v117_v8  ;;  %v80_v17 = vshrl.u32 %v79_v13, 16 }
  0x14   :  { %v142_v22 = vxor.u32 %v141_v18, %v140_v14 }
  0x15   :  { %v50_v19 = vmul.u32 2146121005, %v49_v15  ;;  %v120_v20 = vmul.u32 2146121005, %v119_v16  ;;  %v81_v21 = vxor.u32 %v80_v17, %v79_v13 }
  0x16   :  { %v143_v26 = vmul.u32 2146121005, %v142_v22 }
  0x17   :  { %v51_v23 = vshrl.u32 %v50_v19, 15  ;;  %v121_v24 = vshrl.u32 %v120_v20, 15  ;;  %v82_v25 = vmul.u32 2146121005, %v81_v21 }
  0x18   :  { %v144_v29 = vshrl.u32 %v143_v26, 15 }
  0x19   :  { %v52_v27 = vxor.u32 %v51_v23, %v50_v19  ;;  %v83_v28 = vshrl.u32 %v82_v25, 15  ;;  %v122_v32 = vxor.u32 %v121_v24, %v120_v20 }
  0x1a   :  { %v145_v33 = vxor.u32 %v144_v29, %v143_v26 }
  0x1b   :  { %v53_v30 = vmul.u32 2221713035, %v52_v27  ;;  %v84_v31 = vxor.u32 %v83_v28, %v82_v25  ;;  %v123_v39 = vmul.u32 2221713035, %v122_v32 }
  0x1c   :  { %v146_v36 = vmul.u32 2221713035, %v145_v33 }
  0x1d   :  { %v54_v34 = vshrl.u32 %v53_v30, 16  ;;  %v85_v35 = vmul.u32 2221713035, %v84_v31  ;;  %v124_v46 = vshrl.u32 %v123_v39, 16 }
  0x1e   :  { %v147_v40 = vshrl.u32 %v146_v36, 16 }
  0x1f   :  { %v55_v37 = vxor.u32 %v54_v34, %v53_v30  ;;  %v86_v38 = vshrl.u32 %v85_v35, 16  ;;  %v125_v53 = vxor.u32 %v124_v46, %v123_v39 }
  0x20   :  { %v148_v43 = vxor.u32 %v147_v40, %v146_v36  ;;  %v565_v40 = vmov 683565275  }
  0x21   :  { %v56_v41 = vadd.s32 2654435769, %v55_v37  ;;  %v87_v42 = vxor.u32 %v86_v38, %v85_v35  ;;  %v126_v60 = vadd.s32 2654435769, %v125_v53 }
  0x22   :  { %v149_v47 = vadd.s32 2654435769, %v148_v43 }
  0x23   :  { %v57_v44 = vshrl.u32 %v56_v41, 16  ;;  %v88_v45 = vadd.s32 2654435769, %v87_v42  ;;  %v127_v3 = vshrl.u32 %v126_v60, 16  ;;  %v566_v42 = vmov 2475754826  }
  0x24   :  { %v150_v50 = vshrl.u32 %v149_v47, 16 }
  0x25   :  { %v58_v48 = vxor.u32 %v57_v44, %v56_v41  ;;  %v89_v49 = vshrl.u32 %v88_v45, 16  ;;  %v128_v12 = vxor.u32 %v127_v3, %v126_v60  ;;  %v567_v44 = vmov 2131351028  }
  0x26   :  { %v151_v54 = vxor.u32 %v150_v50, %v149_v47  ;;  %v570_v60 = vmov 1326507024  }
  0x27   :  { %v59_v51 = vmul.u32 2146121005, %v58_v48  ;;  %v90_v52 = vxor.u32 %v89_v49, %v88_v45  ;;  %v129_v19 = vmul.u32 2146121005, %v128_v12  ;;  %v568_v49 = vmov 2102212464  }
  0x28   :  { %v152_v57 = vmul.u32 2146121005, %v151_v54  ;;  %v569_v54 = vmov 920167782  }
  0x29   :  { %v60_v55 = vshrl.u32 %v59_v51, 15  ;;  %v91_v56 = vmul.u32 2146121005, %v90_v52  ;;  %v130_v25 = vshrl.u32 %v129_v19, 15 }
  0x2a   :  { %v153_v61 = vshrl.u32 %v152_v57, 15 }
  0x2b   :  { %v61_v58 = vxor.u32 %v60_v55, %v59_v51  ;;  %v92_v59 = vshrl.u32 %v91_v56, 15  ;;  %v131_v28 = vxor.u32 %v130_v25, %v129_v19 }
  0x2c   :  { %v154_v0 = vxor.u32 %v153_v61, %v152_v57 }
  0x2d   :  { %v62_v62 = vmul.u32 2221713035, %v61_v58  ;;  %v93_v63 = vxor.u32 %v92_v59, %v91_v56  ;;  %v132_v31 = vmul.u32 2221713035, %v131_v28 }
  0x2e   :  { %v155_v5 = vmul.u32 2221713035, %v154_v0 }
  0x2f   :  { %v63_v1 = vshrl.u32 %v62_v62, 16  ;;  %v94_v2 = vmul.u32 2221713035, %v93_v63  ;;  %v133_v34 = vshrl.u32 %v132_v31, 16 }
  0x30   :  { %v156_v8 = vshrl.u32 %v155_v5, 16 }
  0x31   :  { %v64_v6 = vxor.u32 %v63_v1, %v62_v62  ;;  %v95_v7 = vshrl.u32 %v94_v2, 16  ;;  %v134_v46 = vxor.u32 %v133_v34, %v132_v31 }
  0x32   :  { %v157_v13 = vxor.u32 %v156_v8, %v155_v5 }
  0x33   :  { %v65_v10 = vshrl.u32 %v64_v6, 8  ;;  %v96_v11 = vxor.u32 %v95_v7, %v94_v2  ;;  %v135_v62 = vshrl.u32 %v134_v46, 8 }
  0x34   :  { %v158_v16 = vshrl.u32 %v157_v13, 8 }
  0x35   :  { %v66_v14 = vcvt.s32.f32 %v65_v10  ;;  %v97_v15 = vshrl.u32 %v96_v11, 8 }
  0x36   :  { %v159_v20 = vcvt.s32.f32 %v158_v16 }
  0x37   :  { %v67_v17 = vmul.f32 5.9604645e-08, %v66_v14  ;;  %v98_v18 = vcvt.s32.f32 %v97_v15 }
  0x38   :  { %v160_v23 = vmul.f32 5.9604645e-08, %v159_v20 }
  0x39   :  { %v68_v21 = vsel %vm44_vm0, %v67_v17, 0.0  ;;  %v99_v22 = vmul.f32 5.9604645e-08, %v98_v18  ;;  %v136_v18 = vcvt.s32.f32 %v135_v62 }
  0x3a   :  { %69 = vadd.xlane.f32.xlu0 %v68_v21  ;;  %v607_v26 = vmul.f32 6.2831855, %v160_v23 }
  0x3b   :  { %v100_v24 = vsel %vm45_vm1, %v99_v22, 0.0  ;;  %v137_v23 = vadd.f32 1.0, %v136_v18 }
  0x3c   :  { %v175_v27 = vand.u32 2139095040, %v607_v26  ;;  %v172_v33 = vand.u32 2147483647, %v607_v26  ;;  %vm174_vm9 = vcmp.lt.s32.totalorder %v607_v26, 0 }
  0x3e   :  { %101 = vadd.xlane.f32.xlu0 %v100_v24  ;;  %v176_v29 = vshrl.u32 %v175_v27, 23  ;;  %v179_v37 = vand.u32 8388607, %v172_v33  ;;  %v138_v27 = vmul.f32 5.9604645e-08, %v137_v23  ;;  %vm173_vm10 = vcmp.le.f32.partialorder %v172_v33, 0.7853982 }
  0x40   :  { %v472_v30 = vadd.s32 4294967169, %v176_v29  ;;  %v180_v52 = vor.u32 8388608, %v179_v37  ;;  %502 = vlog2.f32 %v138_v27 }
  0x42   :  { %v182_v32 = vadd.s32 1, %v472_v30  ;;  %v220_v3 = vshll.u32 %v180_v52, 8 }
  0x44   :  { %vm183_vm2 = vcmp.gt.s32.totalorder %v182_v32, 0 }
  0x45   :  { %v184_v35 = vsel %vm183_vm2, %v182_v32, 0 }
  0x46   :  { %v186_v36 = vand.u32 31, %v184_v35  ;;  %v185_v38 = vshrl.u32 %v184_v35, 5 }
  0x48   :  { %v187_v39 = vsub.s32 32, %v186_v36  ;;  %v189_v41 = vshll.u32 %v565_v40, %v186_v36  ;;  %v192_v43 = vshll.u32 %v566_v42, %v186_v36  ;;  %v195_v45 = vshll.u32 %v567_v44, %v186_v36 }
  0x49   :  { %v198_v51 = vshll.u32 %v568_v49, %v186_v36  ;;  %v201_v55 = vshll.u32 %v569_v54, %v186_v36  ;;  %vm204_vm3 = vcmp.lt.s32.totalorder %v185_v38, 1  ;;  %vm207_vm4 = vcmp.lt.s32.totalorder %v185_v38, 4 }
  0x4a   :  { %v190_v47 = vshrl.u32 %v566_v42, %v187_v39  ;;  %v193_v48 = vshrl.u32 %v567_v44, %v187_v39  ;;  %v196_v50 = vshrl.u32 %v568_v49, %v187_v39  ;;  %v188_v53 = vshrl.u32 %v565_v40, %v187_v39 }
  0x4b   :  { %v199_v59 = vshrl.u32 %v569_v54, %v187_v39  ;;  %v202_v61 = vshrl.u32 %v570_v60, %v187_v39  ;;  %vm206_vm5 = vcmp.lt.s32.totalorder %v185_v38, 3  ;;  %vm205_vm6 = vcmp.lt.s32.totalorder %v185_v38, 2 }
  0x4c   :  { %v191_v56 = vor.u32 %v190_v47, %v189_v41  ;;  %v194_v57 = vor.u32 %v193_v48, %v192_v43  ;;  %v197_v58 = vor.u32 %v196_v50, %v195_v45 }
  0x4d   :  { %v200_v63 = vor.u32 %v199_v59, %v198_v51  ;;  %v203_v1 = vor.u32 %v202_v61, %v201_v55  ;;  %v503_v38 = vpop.eup %502 }
  0x4e   :  { %v209_v0 = vsel %vm207_vm4, %v197_v58, 2102212464  ;;  %v212_v2 = vsel %vm204_vm3, %v191_v56, %v194_v57  ;;  %v208_v5 = vsel %vm204_vm3, %v188_v53, %v191_v56  ;;  %v216_v8 = vsel %vm204_vm3, %v194_v57, %v197_v58 }
  0x4f   :  { %v210_v6 = vsel %vm206_vm5, %v194_v57, %v209_v0  ;;  %v213_v7 = vsel %vm207_vm4, %v200_v63, 920167782  ;;  %v217_v11 = vsel %vm207_vm4, %v203_v1, 1326507024  ;;  %v162_v43 = vmul.f32 0.6931472, %v503_v38 }
  0x50   :  { %v214_v10 = vsel %vm206_vm5, %v197_v58, %v213_v7  ;;  %v218_v13 = vsel %vm206_vm5, %v200_v63, %v217_v11  ;;  %v211_v14 = vsel %vm205_vm6, %v208_v5, %v210_v6  ;;  %vm264_vm5 = vweird.f32 %v607_v26 }
  0x51   :  { %v215_v12 = vsel %vm205_vm6, %v212_v2, %v214_v10  ;;  %v219_v15 = vsel %vm205_vm6, %v216_v8, %v218_v13  ;;  %v227_v21 = vmul.u32 %v220_v3, %v211_v14  ;;  %v163_v48 = vmul.f32 -2.0, %v162_v43 }
  0x52   :  { %v616_v16 = vmul.u32.u64.low %v220_v3, %v215_v12  ;;  %v617_v17 = vmul.u32.u64.high %v220_v3, %v215_v12, %v616_v16  ;;  %v619_v19 = vmul.u32.u64.low %v220_v3, %v219_v15  ;;  %v620_v20 = vmul.u32.u64.high %v220_v3, %v219_v15, %v619_v19 }
  0x53   :  { %504 = vrsqrt.f32 %v163_v48  ;;  %vm166_vm11 = vcmp.eq.f32.partialorder %v163_v48, inf  ;;  %vm168_vm12 = vcmp.eq.f32.partialorder %v163_v48, 0.0  ;;  %v169_v1 = vand.u32 2147483648, %v163_v48 }
  0x54   :  { %v230_v22 = vadd.s32 1, %v617_v17  ;;  %vm229_vm7 = vc.u32 %v620_v20, %v616_v16  ;;  %v228_v37 = vadd.s32 %v616_v16, %v620_v20  ;;  %vm27_vm6 = vcmask 0  }
  0x55   :  { %v413_v20 = vstv %s471_s0 }
  0x56   :  { %v231_v24 = vsel %vm229_vm7, %v230_v22, %v617_v17 }
  0x57   :  { %v232_v25 = vadd.s32 %v231_v24, %v227_v21  ;;  %v414_v21 = vxor.u32 %v413_v20, %v592_v4 }
  0x59   :  { %v233_v28 = vadd.s32 536870912, %v232_v25  ;;  %v415_v22 = vshrl.u32 %v414_v21, 16 }
  0x5b   :  { %v234_v29 = vshrl.u32 %v233_v28, 30  ;;  %v416_v27 = vxor.u32 %v415_v22, %v414_v21 }
  0x5d   :  { %v235_v30 = vshll.u32 %v234_v29, 30  ;;  %v258_v54 = vsub.s32 4, %v234_v29 }
  0x5f   :  { %v236_v31 = vsub.s32 %v232_v25, %v235_v30  ;;  %v259_v57 = vsel %vm174_vm9, %v258_v54, %v234_v29 }
  0x60   :  { %v261_v58 = vsel %vm173_vm10, 0, %v259_v57  ;;  %v505_v60 = vpop.eup %504 }
  0x61   :  { %v238_v32 = vsub.s32 0, %v236_v31  ;;  %v380_v59 = vadd.s32 3, %v261_v58  ;;  %v265_v61 = vand.u32 3, %v261_v58  ;;  %v165_v63 = vmul.f32 %v505_v60, %v163_v48 }
  0x63   :  { %v473_v34 = vmin.u32 %v238_v32, %v236_v31  ;;  %v381_v62 = vand.u32 3, %v380_v59  ;;  %vm270_vm13 = vcmp.eq.s32.totalorder %v265_v61, 2  ;;  %v167_v2 = vsel %vm166_vm11, %v163_v48, %v165_v63 }
  0x64   :  { %vm267_vm15 = vcmp.eq.s32.totalorder %v265_v61, 0  ;;  %vm266_vm3 = vcmp.lt.s32.totalorder %v265_v61, 2  ;;  %v170_v8 = vsel %vm168_vm12, %v169_v1, %v167_v2  ;;  %v417_v32 = vmul.u32 2146121005, %v416_v27 }
  0x65   :  { %v240_v35 = vclz %v473_v34  ;;  %vm386_vm14 = vcmp.eq.s32.totalorder %v381_v62, 2  ;;  %vm383_vm2 = vcmp.eq.s32.totalorder %v381_v62, 0  ;;  %vm382_vm4 = vcmp.lt.s32.totalorder %v381_v62, 2 }
  0x66   :  { %v418_v38 = vshrl.u32 %v417_v32, 15 }
  0x67   :  { %v474_v36 = vadd.s32 4294967294, %v240_v35 }
  0x68   :  { %v419_v4 = vxor.u32 %v418_v38, %v417_v32 }
  0x69   :  { %vm475_vm8 = vcmp.lt.s32.totalorder %v474_v36, 0 }
  0x6a   :  { %v243_v39 = vsel %vm475_vm8, 0, %v474_v36 }
  0x6b   :  { %v244_v40 = vsub.s32 32, %v243_v39  ;;  %v245_v41 = vshll.u32 %v236_v31, %v243_v39  ;;  %v248_v42 = vsub.s32 4294967266, %v243_v39 }
  0x6d   :  { %v246_v44 = vshrl.u32 %v228_v37, %v244_v40  ;;  %v249_v45 = vadd.s32 127, %v248_v42 }
  0x6f   :  { %v247_v46 = vor.u32 %v246_v44, %v245_v41  ;;  %v250_v47 = vshll.u32 %v249_v45, 23  ;;  %v420_v41 = vmul.u32 2221713035, %v419_v4 }
  0x71   :  { %v251_v49 = vor.u32 4788187, %v250_v47  ;;  %v254_v50 = vcvt.s32.f32 %v247_v46  ;;  %v421_v42 = vshrl.u32 %v420_v41, 16 }
  0x73   :  { %v252_v51 = vand.u32 2147483647, %v251_v49  ;;  %v422_v43 = vxor.u32 %v421_v42, %v420_v41 }
  0x75   :  { %v255_v52 = vmul.f32 %v254_v50, %v252_v51  ;;  %v423_v44 = vadd.s32 2654435769, %v422_v43 }
  0x77   :  { %v256_v53 = vxor.u32 2147483648, %v255_v52  ;;  %v424_v45 = vshrl.u32 %v423_v44, 16 }
  0x79   :  { %v257_v55 = vsel %vm174_vm9, %v256_v53, %v255_v52  ;;  %v425_v46 = vxor.u32 %v424_v45, %v423_v44 }
  0x7a   :  { %v260_v56 = vsel %vm173_vm10, %v607_v26, %v257_v55  ;;  %v571_v26 = vmov 0.0  }
  0x7b   :  { %506 = vcosq.f32 %v260_v56  ;;  %29 = vst.msk [vmem:[#allocation3] sm:$0x1] %vm27_vm6, %v571_v26  ;;  %28 = vst.msk [vmem:[#allocation2] sm:$0x1] %vm27_vm6, %v571_v26  ;;  %v426_v47 = vmul.u32 2146121005, %v425_v46 }
  0x7c   :  { %508 = vsinq.f32 %v260_v56 }
  0x7d   :  { %v427_v48 = vshrl.u32 %v426_v47, 15 }
  0x7f   :  { %v428_v49 = vxor.u32 %v427_v48, %v426_v47 }
  0x81   :  { %v429_v50 = vmul.u32 2221713035, %v428_v49 }
  0x82   :  { %v112_v55 = vld [vmem:[#allocation3] sm:$0x1] }
  0x83   :  { %v430_v51 = vshrl.u32 %v429_v50, 16 }
  0x85   :  { %v431_v52 = vxor.u32 %v430_v51, %v429_v50 }
  0x87   :  { %v432_v56 = vshrl.u32 %v431_v52, 8 }
  0x88   :  { %v507_v0 = vpop.eup %506 }
  0x89   :  { %v509_v33 = vpop.eup %508  ;;  %v271_v3 = vxor.u32 2147483648, %v507_v0  ;;  %v433_v59 = vcvt.s32.f32 %v432_v56 }
  0x8a   :  { %v268_v5 = vxor.u32 2147483648, %v509_v33 }
  0x8b   :  { %v272_v6 = vsel %vm270_vm13, %v271_v3, %v509_v33  ;;  %v388_v7 = vsel %vm386_vm14, %v271_v3, %v509_v33  ;;  %v434_v60 = vmul.f32 5.9604645e-08, %v433_v59 }
  0x8c   :  { %v269_v10 = vsel %vm267_vm15, %v507_v0, %v268_v5  ;;  %v385_v11 = vsel %vm383_vm2, %v507_v0, %v268_v5 }
  0x8d   :  { %v273_v12 = vsel %vm266_vm3, %v269_v10, %v272_v6  ;;  %v389_v13 = vsel %vm382_vm4, %v385_v11, %v388_v7 }
  0x8e   :  { %v274_v14 = vsel %vm264_vm5, nan, %v273_v12  ;;  %v390_v15 = vsel %vm264_vm5, nan, %v389_v13 }
  0x8f   :  { %v275_v16 = vmul.f32 %v274_v14, %v170_v8  ;;  %v391_v17 = vmul.f32 %v390_v15, %v170_v8 }
  0x91   :  { %v276_v18 = vsel %vm44_vm0, %v275_v16, 0.0  ;;  %v392_v19 = vsel %vm45_vm1, %v391_v17, 0.0  ;;  %vm435_vm0 = vcmp.ge.f32.partialorder %v434_v60, 0.5 }
  0x92   :  { %277 = vadd.xlane.f32.xlu1 %v276_v18 }
  0x96   :  { %393 = vadd.xlane.f32.xlu1 %v392_v19 }
  0xc3   :  { %v70_v23 = vpop.xlane.xlu0 %69 }
  0xc4   :  { %v71_v24 = vrot.slane %v70_v23, 4 }
  0xc6   :  { %v72_v25 = vadd.f32 %v71_v24, %v70_v23 }
  0xc7   :  { %v102_v28 = vpop.xlane.xlu0 %101 }
  0xc8   :  { %v73_v29 = vrot.slane %v72_v25, 2  ;;  %v103_v9 = vrot.slane %v102_v28, 4 }
  0xca   :  { %v104_v30 = vadd.f32 %v103_v9, %v102_v28  ;;  %v74_v31 = vadd.f32 %v73_v29, %v72_v25 }
  0xcc   :  { %v105_v34 = vrot.slane %v104_v30, 2  ;;  %v75_v35 = vrot.slane %v74_v31, 1 }
  0xce   :  { %v106_v36 = vadd.f32 %v105_v34, %v104_v30  ;;  %v76_v37 = vadd.f32 %v75_v35, %v74_v31 }
  0xd0   :  { %480 = vpush %v76_v37  ;;  %v107_v39 = vrot.slane %v106_v36, 1 }
  0xd2   :  { %v108_v40 = vadd.f32 %v107_v39, %v106_v36 }
  0xd4   :  { %482 = vpush %v108_v40 }
 0x101   :  { %s481_s15 = spop %480 }
 0x102   :  { %v78_v53 = vstv %s481_s15 }
 0x105   :  { %s483_s16 = spop %482 }
 0x106   :  { %v110_v54 = vstv %s483_s16 }
 0x107   :  { %v111_v57 = vadd.f32 %v110_v54, %v78_v53 }
 0x109   :  { %v113_v58 = vadd.f32 %v112_v55, %v111_v57 }
 0x10b   :  { %115 = vst.msk [vmem:[#allocation3] sm:$0x1] %vm27_vm6, %v113_v58 }
 0x112   :  { %v436_v61 = vld [vmem:[#allocation3] sm:$0x1] }
 0x113   :  { %v437_v62 = vmul.f32 2.0, %v436_v61 }
 0x115   :  { %v438_v63 = vsel %vm435_vm0, %v437_v62, 0.0 }
 0x116   :  { %439 = vst.msk [vmem:[#allocation8] sm:$0x1] %vm27_vm6, %v438_v63 }
 0x117   :  { %529 = shalt.err (!%p526_p4)
}
 0x118   :  { %459 = dma.vmem_to_hbm [thread:$0]  %s457_s18, 16, %s650_s2, [#allocation9]   ;;  %v404_v17 = vld [vmem:[#allocation2] sm:$0x1] }
 0x119   :  { %s573_s2 = smov [#allocation7]  }
 0x11a   :  { %s446_s25 = sshll.u32 %s573_s2, 4  ;;  %s447_s25 = int_to_ptr.vmem [resolvable:$true] %s446_s25 }
 0x11b   :  { %v278_v0 = vpop.xlane.xlu1 %277  ;;  %s538_s26 = scalar_lea.vmem %s447_s25, 16  ;;  %s542_s27 = scalar_lea.vmem %s447_s25, 32 }
 0x11c   :  { %v279_v1 = vrot.slane %v278_v0, 4  ;;  %p539_p5 = scmp.ne.s32.totalorder %s447_s25, %s538_s26  ;;  %p543_p6 = scmp.lt.s32.totalorder %s447_s25, %s447_s25 }
 0x11d   :  { %p544_p7 = scmp.lt.s32.totalorder %s542_s27, %s538_s26 }
 0x11e   :  { %v280_v33 = vadd.f32 %v279_v1, %v278_v0 }
 0x11f   :  { %v394_v2 = vpop.xlane.xlu1 %393  ;;  %p545_p8 = por %p544_p7, %p543_p6 }
 0x120   :  { %v281_v3 = vrot.slane %v280_v33, 2  ;;  %v395_v5 = vrot.slane %v394_v2, 4 }
 0x121   :  { %p546_p9 = pnand %p545_p8, %p539_p5 }
 0x122   :  { %v396_v6 = vadd.f32 %v395_v5, %v394_v2  ;;  %v282_v7 = vadd.f32 %v281_v3, %v280_v33 }
 0x124   :  { %v397_v8 = vrot.slane %v396_v6, 2  ;;  %v283_v10 = vrot.slane %v282_v7, 1 }
 0x126   :  { %v398_v11 = vadd.f32 %v397_v8, %v396_v6  ;;  %v284_v12 = vadd.f32 %v283_v10, %v282_v7 }
 0x128   :  { %488 = vpush %v284_v12  ;;  %v399_v13 = vrot.slane %v398_v11, 1 }
 0x12a   :  { %v400_v14 = vadd.f32 %v399_v13, %v398_v11 }
 0x12c   :  { %490 = vpush %v400_v14 }
 0x159   :  { %s489_s23 = spop %488 }
 0x15a   :  { %v286_v15 = vstv %s489_s23 }
 0x15d   :  { %s491_s24 = spop %490 }
 0x15e   :  { %v402_v16 = vstv %s491_s24 }
 0x15f   :  { %v403_v18 = vadd.f32 %v402_v16, %v286_v15 }
 0x161   :  { %v405_v19 = vadd.f32 %v404_v17, %v403_v18 }
 0x163   :  { %406 = vst.msk [vmem:[#allocation2] sm:$0x1] %vm27_vm6, %v405_v19 }
 0x16a   :  { %v410_v26 = vld [vmem:[#allocation2] sm:$0x1] }
 0x16b   :  { %411 = vst.msk [vmem:[#allocation7] sm:$0x1] %vm27_vm6, %v410_v26 }
 0x16c   :  { %549 = shalt.err (!%p546_p9)
}
 0x16d   :  { %449 = dma.vmem_to_hbm [thread:$0]  %s447_s25, 16, %s649_s1, [#allocation5]  }
 0x16e   :  { %560 = dma.done.wait [#allocation5], 16  }
 0x16f   :  { %561 = vsyncadd [#allocation5], 4294967280 }
 0x170   :  { %562 = dma.done.wait [#allocation9], 16  }
 0x171   :  { %563 = vsyncadd [#allocation9], 4294967280 }
 0x172   :  { %466 = vsyncpa [#allocation5], 1 }
 0x173   :  { %467 = vsyncpa [#allocation9], 1 }
 0x174   :  { %468 = vsyncpa [#allocation6], 1 }

</bundles_post_ra>
